<compile_context>
chip_gen: v7x
topology: tpu7x:2x2x1
jax: 0.10.0
libtpu: 0.0.40
codegen_flags: <defaults>
</compile_context>

<pallas_src>
import numpy as np
import jax
import jax.numpy as jnp
from jax.experimental import pallas as pl
from jax.experimental.pallas import tpu as pltpu

# ----- small deterministic problem size --------------------------------------
USER_NUM = 128
ITEM_NUM = 128
N = USER_NUM + ITEM_NUM      # 256 nodes (users + items)
D = 128                      # embedding dim (lane-dense output)
E = 1024                     # number of sparse edges before densification

TM = 128                     # row tile
TK = 128                     # contraction tile


# ----- Pallas kernel: one (TM, D) output tile, accumulated over k -------------
def _gcn_spmm_kernel(adj_ref, emb_ref, out_ref, acc_ref):
    @pl.when(pl.program_id(1) == 0)
    def _():
        acc_ref[...] = jnp.zeros_like(acc_ref)

    acc_ref[...] += jnp.dot(adj_ref[...], emb_ref[...],
                            preferred_element_type=jnp.float32)

    @pl.when(pl.program_id(1) == pl.num_programs(1) - 1)
    def _():
        out_ref[...] = acc_ref[...].astype(out_ref.dtype)


def gcn_layer(adj, embeds, *, tm=TM, tk=TK):
    """out = adj @ embeds  (dense spmm), tiled for the MXU."""
    n, k = adj.shape
    _, d = embeds.shape
    grid = (n // tm, k // tk)
    return pl.pallas_call(
        _gcn_spmm_kernel,
        out_shape=jax.ShapeDtypeStruct((n, d), embeds.dtype),
        grid_spec=pltpu.PrefetchScalarGridSpec(
            num_scalar_prefetch=0,
            grid=grid,
            in_specs=[
                pl.BlockSpec((tm, tk), lambda i, kk: (i, kk)),   # adj row-tile
                pl.BlockSpec((tk, d), lambda i, kk: (kk, 0)),    # embeds k-tile
            ],
            out_specs=pl.BlockSpec((tm, d), lambda i, kk: (i, 0)),
            scratch_shapes=[pltpu.VMEM((tm, d), jnp.float32)],
        ),
        compiler_params=pltpu.CompilerParams(
            dimension_semantics=("parallel", "arbitrary")),
    )(adj, embeds)


# ----- host-side glue: build the (normalized) dense adjacency -----------------
def build_normalized_adj(erows, ecols, n):
    # densify the sparse COO adjacency (symmetric, bipartite-style), then
    # apply the usual D^-1/2 A D^-1/2 normalization used by AutoCF's adj.
    # TODO(synk): true sparse CSR/COO spmm (torch.spmm on sparse tensors) is
    # not implemented; the adjacency is densified before the kernel.
    a = jnp.zeros((n, n), jnp.float32)
    a = a.at[erows, ecols].set(1.0)
    a = a.at[ecols, erows].set(1.0)
    deg = jnp.sum(a, axis=1, keepdims=True) + 1e-12
    d_inv_sqrt = jax.lax.rsqrt(deg)
    return a * d_inv_sqrt * d_inv_sqrt.T


@jax.jit
def gcn_forward(erows, ecols, embeds):
    adj = build_normalized_adj(erows, ecols, embeds.shape[0])
    return gcn_layer(adj, embeds)


if __name__ == "__main__":
    key = jax.random.PRNGKey(0)
    k_r, k_c, k_e = jax.random.split(key, 3)

    # sparse adjacency as an edge list (user/item bipartite edges)
    erows = jax.random.randint(k_r, (E,), 0, USER_NUM)
    ecols = jax.random.randint(k_c, (E,), USER_NUM, N)
    embeds = jax.random.normal(k_e, (N, D), jnp.float32)

    out = gcn_forward(erows, ecols, embeds)
    out = jax.block_until_ready(out)

    # pure-numpy reference of the same dense math
    adj_np = np.zeros((N, N), np.float64)
    er = np.asarray(erows)
    ec = np.asarray(ecols)
    adj_np[er, ec] = 1.0
    adj_np[ec, er] = 1.0
    deg = adj_np.sum(1, keepdims=True) + 1e-12
    adj_np = adj_np / np.sqrt(deg) / np.sqrt(deg.T)
    ref = adj_np @ np.asarray(embeds, np.float64)

    np.testing.assert_allclose(np.asarray(out), ref, rtol=1e-4, atol=1e-4)
    print("KERNEL_OK")
</pallas_src>

<mosaic_0001>
module attributes {stable_mosaic.version = 11 : i64} {
  func.func @_gcn_spmm_kernel(%arg0: i32, %arg1: i32, %arg2: memref<128x128xf32, #tpu.memory_space<vmem>>, %arg3: memref<128x128xf32, #tpu.memory_space<vmem>>, %arg4: memref<128x128xf32, #tpu.memory_space<vmem>>, %arg5: memref<128x128xf32, #tpu.memory_space<vmem>>) attributes {dimension_semantics = [#tpu.dimension_semantics<parallel>, #tpu.dimension_semantics<arbitrary>], iteration_bounds = array<i64: 2, 2>, scalar_prefetch = 0 : i64, scratch_operands = 1 : i64, tpu.core_type = #tpu.core_type<tc>, window_params = [{transform_indices = @transform_0, window_bounds = array<i64: 128, 128>}, {transform_indices = @transform_1, window_bounds = array<i64: 128, 128>}, {transform_indices = @transform_2, window_bounds = array<i64: 128, 128>}]} {
    %c0_i32 = arith.constant 0 : i32
    %0 = arith.cmpi eq, %arg1, %c0_i32 : i32
    %1 = arith.extui %0 : i1 to i32
    %c0_i32_0 = arith.constant 0 : i32
    %2 = arith.cmpi ne, %1, %c0_i32_0 : i32
    scf.if %2 {
      %cst_9 = arith.constant 0.000000e+00 : f32
      %12 = vector.broadcast %cst_9 : f32 to vector<128x128xf32>
      %c0_10 = arith.constant 0 : index
      %c0_11 = arith.constant 0 : index
      %13 = vector.load %arg5[%c0_10, %c0_11] : memref<128x128xf32, #tpu.memory_space<vmem>>, vector<128x128xf32>
      tpu.vector_store %arg5[%c0_10, %c0_11], %12 {strides = array<i32>} : memref<128x128xf32, #tpu.memory_space<vmem>>, vector<128x128xf32>,
    } else {
    }
    %c0 = arith.constant 0 : index
    %c0_1 = arith.constant 0 : index
    %3 = vector.load %arg5[%c0, %c0_1] : memref<128x128xf32, #tpu.memory_space<vmem>>, vector<128x128xf32>
    %c0_2 = arith.constant 0 : index
    %c0_3 = arith.constant 0 : index
    %4 = vector.load %arg2[%c0_2, %c0_3] : memref<128x128xf32, #tpu.memory_space<vmem>>, vector<128x128xf32>
    %c0_4 = arith.constant 0 : index
    %c0_5 = arith.constant 0 : index
    %5 = vector.load %arg3[%c0_4, %c0_5] : memref<128x128xf32, #tpu.memory_space<vmem>>, vector<128x128xf32>
    %cst = arith.constant dense<0.000000e+00> : vector<128x128xf32>
    %6 = tpu.matmul %4, %5, %cst {dimension_numbers = #tpu.dot_dimension_numbers<[1], [0], [0], [1], [0, 0, 1, 1], [], []>} : vector<128x128xf32>, vector<128x128xf32>, vector<128x128xf32> -> vector<128x128xf32>
    %7 = arith.addf %3, %6 : vector<128x128xf32>
    %c0_6 = arith.constant 0 : index
    %c0_7 = arith.constant 0 : index
    %8 = vector.load %arg5[%c0_6, %c0_7] : memref<128x128xf32, #tpu.memory_space<vmem>>, vector<128x128xf32>
    tpu.vector_store %arg5[%c0_6, %c0_7], %7 {strides = array<i32>} : memref<128x128xf32, #tpu.memory_space<vmem>>, vector<128x128xf32>,
    %c1_i32 = arith.constant 1 : i32
    %9 = arith.cmpi eq, %arg1, %c1_i32 : i32
    %10 = arith.extui %9 : i1 to i32
    %c0_i32_8 = arith.constant 0 : i32
    %11 = arith.cmpi ne, %10, %c0_i32_8 : i32
    scf.if %11 {
      %c0_9 = arith.constant 0 : index
      %c0_10 = arith.constant 0 : index
      %12 = vector.load %arg5[%c0_9, %c0_10] : memref<128x128xf32, #tpu.memory_space<vmem>>, vector<128x128xf32>
      %c0_11 = arith.constant 0 : index
      %c0_12 = arith.constant 0 : index
      %13 = vector.load %arg4[%c0_11, %c0_12] : memref<128x128xf32, #tpu.memory_space<vmem>>, vector<128x128xf32>
      tpu.vector_store %arg4[%c0_11, %c0_12], %12 {strides = array<i32>} : memref<128x128xf32, #tpu.memory_space<vmem>>, vector<128x128xf32>,
    } else {
    }
    return
  }
  func.func @transform_0(%arg0: i32, %arg1: i32) -> (i32, i32) {
    %c0_i32 = arith.constant 0 : i32
    return %arg0, %arg1 : i32, i32
  }
  func.func @transform_1(%arg0: i32, %arg1: i32) -> (i32, i32) {
    %c0_i32 = arith.constant 0 : i32
    %c0_i32_0 = arith.constant 0 : i32
    return %arg1, %c0_i32 : i32, i32
  }
  func.func @transform_2(%arg0: i32, %arg1: i32) -> (i32, i32) {
    %c0_i32 = arith.constant 0 : i32
    %c0_i32_0 = arith.constant 0 : i32
    return %arg0, %c0_i32 : i32, i32
  }
}

</mosaic_0001>

<bundles_post_ra>
// kernel: gcn_forward.1
= control target key start
LH: loop header
LB: loop body
LE: loop exit
PB: predicated region body
PF: predicated region fallthrough
CT: control target
= control target key end

     0   :  { %7 = vsyncpa [#allocation5], 0  ;;  %s1296_s0 = inlined_call_operand.vmem [shape: f32[256,256], index: 0, kind: input, shape index: {}]   ;;  %s1297_s1 = inlined_call_operand.vmem [shape: f32[256,128], index: 1, kind: input, shape index: {}]   ;;  %s1298_s2 = inlined_call_operand.hbm [shape: f32[256,128], index: 2, kind: output, shape index: {}]  }
   0x1   :  { %9 = vsyncpa [#allocation5 + $0x1], 0  ;;  %s1044_s9 = smov 0   ;;  %s1046_s10 = smov 0  }
   0x2   :  { %s1048_s11 = smov 0   ;;  %s1050_s12 = smov 0  }
   0x3   :  { %s1052_s13 = smov 0   ;;  %s1054_s14 = smov 0  }
   0x4   :  { %s1056_s15 = smov 0   ;;  %s1058_s16 = smov 0  }
   0x5   :  { %s1060_s17 = smov 0   ;;  %s1062_s18 = smov 0  }
   0x6 LB: > { %s665_s19 = sadd.s32 4294967295, %s1023_s18   ;;  %s666_s20 = sadd.s32 4294967294, %s1023_s18   ;;  %s1023_s18 = sphi %s1062_s18, %s15_s18   ;;  %s1019_s17 = sphi %s1060_s17, %s1310_s17   ;;  %s1015_s16 = sphi %s1058_s16, %s1309_s16   ;;  %s1011_s15 = sphi %s1056_s15, %s1308_s15   ;;  %s1007_s14 = sphi %s1054_s14, %s1307_s14   ;;  %s1003_s13 = sphi %s1052_s13, %s1306_s13   ;;  %s999_s12 = sphi %s1050_s12, %s1305_s12   ;;  %s995_s11 = sphi %s1048_s11, %s1304_s11   ;;  %s991_s10 = sphi %s1046_s10, %s1303_s10   ;;  %s987_s9 = sphi %s1044_s9, %s1302_s9  }
   0x7   : > { %s24_s21 = sadd.s32 1, %s1015_s16  ;;  %s27_s22 = sadd.s32 1, %s1019_s17 }
   0x8   : > { %p25_p0 = scmp.ge.s32.totalorder %s24_s21, 2  ;;  %s36_s23 = sadd.s32 1, %s1003_s13 }
   0x9   : > { %p43_p1 = scmp.ne.s32.totalorder %s1003_s13, %s999_s12  ;;  %p44_p2 = scmp.eq.s32.totalorder %s1023_s18, 0 }
   0xa   : > { %s1312_s21 = smov (%p25_p0, %s24_s21), 0  ;;  %s1314_s22 = smov (!%p25_p0, %s27_s22), %s1019_s17 }
   0xb   : > { %s32_s24 = ssub.s32 %s1015_s16, %s1312_s21  ;;  %p1107_p3 = por %p44_p2, %p43_p1 }
   0xc   : > { %p29_p4 = scmp.ge.s32.totalorder %s1314_s22, 2  ;;  %s88_s26 = sadd.s32 1, %s995_s11 }
   0xd   : > { %p98_p5 = scmp.ne.s32.totalorder %s995_s11, %s991_s10  ;;  %p99_p6 = scmp.eq.s32.totalorder %s665_s19, 3 }
   0xe   : > { %s1316_s22 = smov (%p29_p4, %s1314_s22), 0  ;;  %p104_p8 = scmp.ne.s32.totalorder %s991_s10, %s987_s9 }
   0xf   : > { %p1116_p7 = por %p99_p6, %p98_p5  ;;  %s31_s28 = ssub.s32 %s1019_s17, %s1316_s22 }
  0x10   : > { %p105_p9 = scmp.eq.s32.totalorder %s666_s20, 3  ;;  %s33_s29 = sor.u32 %s32_s24, %s31_s28 }
  0x11   : > { %p86_p10 = scmp.eq.s32.totalorder %s31_s28, 0  ;;  %p34_p11 = scmp.eq.s32.totalorder %s33_s29, 0 }
  0x12   : > { %p1124_p12 = por %p105_p9, %p104_p8  ;;  %p668_p13 = scmp.ge.s32.totalorder %s1023_s18, 4 }
  0x13   : > { %s1129_s3 = scalar_select %p86_p10, %s995_s11, %s88_s26  }
  0x14   : > { %s1132_s4 = scalar_select %p34_p11, %s1003_s13, %s36_s23  }
  0x15   : > { %121 = sbr.rel (%p668_p13) target bundleno = 42 (0x2a), region = 16 }
  0x1c   : > { %124 = sbr.rel (!%p1107_p3) target bundleno = 42 (0x2a), region = 20  ;;  %s126_s5 = sand.u32 (%p1107_p3), 1, %s1003_s13  }
  0x1d   : > { %s685_s6 = sshll.u32 (%p1107_p3), %s1019_s17, 5  ;;  %s669_s7 = sshll.u32 (%p1107_p3), %s126_s5, 7 }
  0x1e   : > { %s131_s8 = sadd.s32 (%p1107_p3), %s1015_s16, %s685_s6  ;;  %s128_s23 = scalar_lea.vmem (%p1107_p3), [#allocation3], %s669_s7 }
  0x1f   : > { %s672_s19 = sshll.u32 (%p1107_p3), %s131_s8, 3 }
  0x20   : > { %s1143_s26 = scalar_lea.vmem (%p1107_p3), %s1296_s0, %s672_s19 }
  0x21   : > { %v191_v0 = vld [vmem:[%s1143_s26] sm:$0xff] (%p1107_p3)  ;;  %v193_v1 = vld [vmem:[%s1143_s26 + $0x10] sm:$0xff] (%p1107_p3) }
  0x22   : > { %v195_v2 = vld [vmem:[%s1143_s26 + $0x20] sm:$0xff] (%p1107_p3)  ;;  %192 = vst [vmem:[%s128_s23] sm:$0xff] (%p1107_p3), %v191_v0  ;;  %194 = vst [vmem:[%s128_s23 + $0x8] sm:$0xff] (%p1107_p3), %v193_v1  ;;  %v197_v3 = vld [vmem:[%s1143_s26 + $0x30] sm:$0xff] (%p1107_p3) }
  0x23   : > { %196 = vst [vmem:[%s128_s23 + $0x10] sm:$0xff] %v195_v2  ;;  %v199_v4 = vld [vmem:[%s1143_s26 + $0x40] sm:$0xff]  ;;  %v201_v5 = vld [vmem:[%s1143_s26 + $0x50] sm:$0xff]  ;;  %198 = vst [vmem:[%s128_s23 + $0x18] sm:$0xff] %v197_v3 }
  0x24   : > { %200 = vst [vmem:[%s128_s23 + $0x20] sm:$0xff] %v199_v4  ;;  %202 = vst [vmem:[%s128_s23 + $0x28] sm:$0xff] %v201_v5  ;;  %v203_v6 = vld [vmem:[%s1143_s26 + $0x60] sm:$0xff]  ;;  %v205_v7 = vld [vmem:[%s1143_s26 + $0x70] sm:$0xff] }
  0x25   : > { %v207_v8 = vld [vmem:[%s1143_s26 + $0x80] sm:$0xff]  ;;  %204 = vst [vmem:[%s128_s23 + $0x30] sm:$0xff] %v203_v6  ;;  %206 = vst [vmem:[%s128_s23 + $0x38] sm:$0xff] %v205_v7  ;;  %v209_v9 = vld [vmem:[%s1143_s26 + $0x90] sm:$0xff] }
  0x26   : > { %208 = vst [vmem:[%s128_s23 + $0x40] sm:$0xff] %v207_v8  ;;  %v211_v10 = vld [vmem:[%s1143_s26 + $0xa0] sm:$0xff]  ;;  %v213_v11 = vld [vmem:[%s1143_s26 + $0xb0] sm:$0xff]  ;;  %210 = vst [vmem:[%s128_s23 + $0x48] sm:$0xff] %v209_v9 }
  0x27   : > { %212 = vst [vmem:[%s128_s23 + $0x50] sm:$0xff] %v211_v10  ;;  %214 = vst [vmem:[%s128_s23 + $0x58] sm:$0xff] %v213_v11  ;;  %v215_v12 = vld [vmem:[%s1143_s26 + $0xc0] sm:$0xff]  ;;  %v217_v13 = vld [vmem:[%s1143_s26 + $0xd0] sm:$0xff] }
  0x28   : > { %v219_v14 = vld [vmem:[%s1143_s26 + $0xe0] sm:$0xff]  ;;  %216 = vst [vmem:[%s128_s23 + $0x60] sm:$0xff] %v215_v12  ;;  %218 = vst [vmem:[%s128_s23 + $0x68] sm:$0xff] %v217_v13  ;;  %v221_v15 = vld [vmem:[%s1143_s26 + $0xf0] sm:$0xff] }
  0x29   : > { %220 = vst [vmem:[%s128_s23 + $0x70] sm:$0xff] %v219_v14  ;;  %222 = vst [vmem:[%s128_s23 + $0x78] sm:$0xff] %v221_v15 }
  0x2a PF: > { %p673_p0 = scmp.ge.s32.totalorder %s1023_s18, 1  ;;  %p236_p1 = scmp.lt.s32.totalorder %s1023_s18, 5 }
  0x2c   : > { %p237_p2 = pnand %p673_p0, %p236_p1 }
  0x2d   : > { %s243_s25 = sand.u32 (!%p237_p2), 1, %s999_s12   ;;  %s266_s28 = sand.u32 (!%p237_p2), 1, %s991_s10  }
  0x2e   : > { %240 = sbr.rel (%p237_p2) target bundleno = 360 (0x168), region = 62  ;;  %s674_s29 = sshll.u32 (!%p237_p2), %s243_s25, 7 }
  0x2f   : > { %s675_s5 = sshll.u32 (!%p237_p2), %s266_s28, 7  ;;  %s676_s6 = sshll.u32 (!%p237_p2), %s1007_s14, 4 }
  0x30   : > { %p271_p3 = scmp.lt.s32.totalorder (!%p237_p2), %s676_s6, 31  ;;  %s1173_s24 = scalar_lea.vmem (!%p237_p2), [#allocation3], %s674_s29 }
  0x31   : > { %s1175_s26 = scalar_lea.vmem (!%p237_p2), [#allocation4], %s675_s5  ;;  %p678_p4 = scmp.ne.s32.totalorder (!%p237_p2), %s1007_s14, 0 }
  0x35   : > { %s1318_s6 = smov (!%p271_p3, %s676_s6), 31  ;;  %280 = sbr.rel (%p678_p4) target bundleno = 63 (0x3f), region = 70 }
  0x36   : > { %s677_s7 = sshll.u32 %s1318_s6, 3  ;;  %v1025_v16 = vmov (!%p678_p4), 0.0  }
  0x37   : > { %s1171_s20 = scalar_lea.vmem %s1297_s1, %s677_s7  ;;  %281 = vst [vmem:[#allocation2] sm:$0xff] (!%p678_p4), %v1025_v16  ;;  %282 = vst [vmem:[#allocation2 + $0x8] sm:$0xff] (!%p678_p4), %v1025_v16 }
  0x38   : > { %283 = vst [vmem:[#allocation2 + $0x10] sm:$0xff] (!%p678_p4), %v1025_v16  ;;  %284 = vst [vmem:[#allocation2 + $0x18] sm:$0xff] (!%p678_p4), %v1025_v16 }
  0x39   : > { %285 = vst [vmem:[#allocation2 + $0x20] sm:$0xff] (!%p678_p4), %v1025_v16  ;;  %286 = vst [vmem:[#allocation2 + $0x28] sm:$0xff] (!%p678_p4), %v1025_v16 }
  0x3a   : > { %287 = vst [vmem:[#allocation2 + $0x30] sm:$0xff] (!%p678_p4), %v1025_v16  ;;  %288 = vst [vmem:[#allocation2 + $0x38] sm:$0xff] (!%p678_p4), %v1025_v16 }
  0x3b   : > { %289 = vst [vmem:[#allocation2 + $0x40] sm:$0xff] (!%p678_p4), %v1025_v16  ;;  %290 = vst [vmem:[#allocation2 + $0x48] sm:$0xff] (!%p678_p4), %v1025_v16 }
  0x3c   : > { %291 = vst [vmem:[#allocation2 + $0x50] sm:$0xff] %v1025_v16  ;;  %292 = vst [vmem:[#allocation2 + $0x58] sm:$0xff] %v1025_v16 }
  0x3d   : > { %293 = vst [vmem:[#allocation2 + $0x60] sm:$0xff] %v1025_v16  ;;  %294 = vst [vmem:[#allocation2 + $0x68] sm:$0xff] %v1025_v16 }
  0x3e   : > { %295 = vst [vmem:[#allocation2 + $0x70] sm:$0xff] %v1025_v16  ;;  %296 = vst [vmem:[#allocation2 + $0x78] sm:$0xff] %v1025_v16 }
  0x3f PF: > { %v329_v17 = vld [vmem:[%s1171_s20] sm:$0xff]  ;;  %v330_v18 = vld [vmem:[%s1171_s20 + $0x8] sm:$0xff]  ;;  %v331_v19 = vld [vmem:[%s1171_s20 + $0x10] sm:$0xff]  ;;  %p679_p5 = scmp.ne.s32.totalorder %s1007_s14, 1 }
  0x40   : > { %v775_v20 = vpack.c.bf16 %v330_v18, %v329_v17  ;;  %v332_v21 = vld [vmem:[%s1171_s20 + $0x18] sm:$0xff]  ;;  %v333_v23 = vld [vmem:[%s1171_s20 + $0x20] sm:$0xff]  ;;  %v334_v24 = vld [vmem:[%s1171_s20 + $0x28] sm:$0xff] }
  0x41   : > { %v779_v22 = vpack.c.bf16 %v332_v21, %v331_v19  ;;  %v783_v25 = vpack.c.bf16 %v334_v24, %v333_v23  ;;  %v313_v26 = vld [vmem:[%s1173_s24] sm:$0xff]  ;;  %v335_v28 = vld [vmem:[%s1171_s20 + $0x30] sm:$0xff]  ;;  %v336_v29 = vld [vmem:[%s1171_s20 + $0x38] sm:$0xff] }
  0x42   : > { %776 = vmatprep.subr.bf16.mxu0 %v775_v20  ;;  %807 = vmatprep.subr.bf16.mxu1 %v775_v20  ;;  %v321_v27 = vld [vmem:[%s1173_s24 + $0x40] sm:$0xff]  ;;  %v787_v30 = vpack.c.bf16 %v336_v29, %v335_v28  ;;  %v338_v32 = vld [vmem:[%s1171_s20 + $0x48] sm:$0xff]  ;;  %v339_v34 = vld [vmem:[%s1171_s20 + $0x50] sm:$0xff] }
  0x43   : > { %778 = vmatpush3.bf16.msra.mxu0 %v775_v20  ;;  %815 = vmatpush3.bf16.msra.mxu1 %v775_v20  ;;  %v337_v31 = vld [vmem:[%s1171_s20 + $0x40] sm:$0xff]  ;;  %v340_v35 = vld [vmem:[%s1171_s20 + $0x58] sm:$0xff]  ;;  %v342_v38 = vld [vmem:[%s1171_s20 + $0x68] sm:$0xff] }
  0x44   : > { %780 = vmatprep.subr.bf16.mxu0 %v779_v22  ;;  %808 = vmatprep.subr.bf16.mxu1 %v779_v22  ;;  %v791_v33 = vpack.c.bf16 %v338_v32, %v337_v31  ;;  %v795_v36 = vpack.c.bf16 %v340_v35, %v339_v34  ;;  %v341_v37 = vld [vmem:[%s1171_s20 + $0x60] sm:$0xff]  ;;  %v343_v40 = vld [vmem:[%s1171_s20 + $0x70] sm:$0xff]  ;;  %v344_v41 = vld [vmem:[%s1171_s20 + $0x78] sm:$0xff] }
  0x45   : > { %751 = vmatprep.mubr.f32.mxu0 %v313_v26  ;;  %763 = vmatprep.mubr.f32.mxu1 %v321_v27  ;;  %v799_v39 = vpack.c.bf16 %v342_v38, %v341_v37  ;;  %v803_v42 = vpack.c.bf16 %v344_v41, %v343_v40  ;;  %v314_v43 = vld [vmem:[%s1173_s24 + $0x8] sm:$0xff]  ;;  %v315_v45 = vld [vmem:[%s1173_s24 + $0x10] sm:$0xff]  ;;  %v316_v47 = vld [vmem:[%s1173_s24 + $0x18] sm:$0xff] }
  0x46   : > { %v322_v44 = vld [vmem:[%s1173_s24 + $0x48] sm:$0xff]  ;;  %v323_v46 = vld [vmem:[%s1173_s24 + $0x50] sm:$0xff]  ;;  %v324_v48 = vld [vmem:[%s1173_s24 + $0x58] sm:$0xff] }
  0x47   : > { %782 = vmatpush3.bf16.msra.mxu0 %v779_v22  ;;  %816 = vmatpush3.bf16.msra.mxu1 %v779_v22  ;;  %v317_v49 = vld [vmem:[%s1173_s24 + $0x20] sm:$0xff]  ;;  %v318_v51 = vld [vmem:[%s1173_s24 + $0x28] sm:$0xff]  ;;  %v319_v53 = vld [vmem:[%s1173_s24 + $0x30] sm:$0xff] }
  0x48   : > { %784 = vmatprep.subr.bf16.mxu0 %v783_v25  ;;  %809 = vmatprep.subr.bf16.mxu1 %v783_v25  ;;  %v325_v50 = vld [vmem:[%s1173_s24 + $0x60] sm:$0xff]  ;;  %v326_v52 = vld [vmem:[%s1173_s24 + $0x68] sm:$0xff]  ;;  %v327_v54 = vld [vmem:[%s1173_s24 + $0x70] sm:$0xff] }
  0x49   : > { %v320_v55 = vld [vmem:[%s1173_s24 + $0x38] sm:$0xff]  ;;  %v298_v57 = vld [vmem:[#allocation2 + $0x8] sm:$0xff]  ;;  %v297_v59 = vld [vmem:[#allocation2] sm:$0xff] }
  0x4a   : > { %v328_v56 = vld [vmem:[%s1173_s24 + $0x78] sm:$0xff]  ;;  %v306_v58 = vld [vmem:[#allocation2 + $0x48] sm:$0xff]  ;;  %v305_v60 = vld [vmem:[#allocation2 + $0x40] sm:$0xff] }
  0x4b   : > { %786 = vmatpush3.bf16.msra.mxu0 %v783_v25  ;;  %817 = vmatpush3.bf16.msra.mxu1 %v783_v25  ;;  %v300_v5 = vld [vmem:[#allocation2 + $0x18] sm:$0xff]  ;;  %v299_v7 = vld [vmem:[#allocation2 + $0x10] sm:$0xff]  ;;  %v302_v17 = vld [vmem:[#allocation2 + $0x28] sm:$0xff] }
  0x4c   : > { %788 = vmatprep.subr.bf16.mxu0 %v787_v30  ;;  %810 = vmatprep.subr.bf16.mxu1 %v787_v30  ;;  %v308_v6 = vld [vmem:[#allocation2 + $0x58] sm:$0xff]  ;;  %v307_v8 = vld [vmem:[#allocation2 + $0x50] sm:$0xff]  ;;  %v310_v18 = vld [vmem:[#allocation2 + $0x68] sm:$0xff] }
  0x4d   : > { %v301_v19 = vld [vmem:[#allocation2 + $0x20] sm:$0xff]  ;;  %v304_v29 = vld [vmem:[#allocation2 + $0x38] sm:$0xff]  ;;  %v303_v31 = vld [vmem:[#allocation2 + $0x30] sm:$0xff] }
  0x4e   : > { %v309_v20 = vld [vmem:[#allocation2 + $0x60] sm:$0xff]  ;;  %v311_v32 = vld [vmem:[#allocation2 + $0x70] sm:$0xff] }
  0x4f   : > { %790 = vmatpush3.bf16.msra.mxu0 %v787_v30  ;;  %818 = vmatpush3.bf16.msra.mxu1 %v787_v30  ;;  %v312_v30 = vld [vmem:[#allocation2 + $0x78] sm:$0xff] }
  0x50   : > { %792 = vmatprep.subr.bf16.mxu0 %v791_v33  ;;  %811 = vmatprep.subr.bf16.mxu1 %v791_v33 }
  0x53   : > { %794 = vmatpush3.bf16.msra.mxu0 %v791_v33  ;;  %819 = vmatpush3.bf16.msra.mxu1 %v791_v33 }
  0x54   : > { %796 = vmatprep.subr.bf16.mxu0 %v795_v36  ;;  %812 = vmatprep.subr.bf16.mxu1 %v795_v36 }
  0x57   : > { %798 = vmatpush3.bf16.msra.mxu0 %v795_v36  ;;  %820 = vmatpush3.bf16.msra.mxu1 %v795_v36 }
  0x58   : > { %800 = vmatprep.subr.bf16.mxu0 %v799_v39  ;;  %813 = vmatprep.subr.bf16.mxu1 %v799_v39 }
  0x5b   : > { %802 = vmatpush3.bf16.msra.mxu0 %v799_v39  ;;  %821 = vmatpush3.bf16.msra.mxu1 %v799_v39 }
  0x5c   : > { %804 = vmatprep.subr.bf16.mxu0 %v803_v42  ;;  %814 = vmatprep.subr.bf16.mxu1 %v803_v42 }
  0x5f   : > { %806 = vmatpush3.bf16.msra.mxu0 %v803_v42  ;;  %822 = vmatpush3.bf16.msra.mxu1 %v803_v42 }
  0x62   : > { %752 = vmatmul.mubr.f32.vlgmr.msra.gmra.mrb[0].mxu0 %v314_v43  ;;  %764 = vmatmul.mubr.f32.vlgmr.msra.gmra.mrb[0].mxu1 %v322_v44 }
  0x63   : > { %754 = vmatprep.mubr.f32.mxu0 %v315_v45  ;;  %766 = vmatprep.mubr.f32.mxu1 %v323_v46 }
  0x66   : > { %755 = vmatmul.mubr.f32.gmra.mrb[2].mxu0 %v316_v47  ;;  %767 = vmatmul.mubr.f32.gmra.mrb[2].mxu1 %v324_v48 }
  0x67   : > { %757 = vmatprep.mubr.f32.mxu0 %v317_v49  ;;  %769 = vmatprep.mubr.f32.mxu1 %v325_v50 }
  0x6a   : > { %758 = vmatmul.mubr.f32.gmra.mrb[4].mxu0 %v318_v51  ;;  %770 = vmatmul.mubr.f32.gmra.mrb[4].mxu1 %v326_v52 }
  0x6b   : > { %760 = vmatprep.mubr.f32.mxu0 %v319_v53  ;;  %772 = vmatprep.mubr.f32.mxu1 %v327_v54 }
  0x6e   : > { %761 = vmatmul.mubr.f32.gmra.mrb[6].mxu0 %v320_v55  ;;  %773 = vmatmul.mubr.f32.gmra.mrb[6].mxu1 %v328_v56 }
 0x135   : > { %v753_v61 = vpop.f32.mrb[0].mxu0  ;;  %v765_v62 = vpop.f32.mrb[0].mxu1 }
 0x136   : > { %v491_v63 = vadd.f32 %v753_v61, %v298_v57  ;;  %v499_v0 = vadd.f32 %v765_v62, %v306_v58  ;;  %v411_v1 = vpop.f32.mrb[1].mxu0  ;;  %v451_v2 = vpop.f32.mrb[1].mxu1 }
 0x137   : > { %v490_v3 = vadd.f32 %v411_v1, %v297_v59  ;;  %v498_v4 = vadd.f32 %v451_v2, %v305_v60 }
 0x138   : > { %507 = vst [vmem:[#allocation2 + $0x8] sm:$0xff] %v491_v63  ;;  %515 = vst [vmem:[#allocation2 + $0x48] sm:$0xff] %v499_v0 }
 0x139   : > { %506 = vst [vmem:[#allocation2] sm:$0xff] %v490_v3  ;;  %514 = vst [vmem:[#allocation2 + $0x40] sm:$0xff] %v498_v4  ;;  %v756_v9 = vpop.f32.mrb[2].mxu0  ;;  %v768_v10 = vpop.f32.mrb[2].mxu1 }
 0x13a   : > { %v493_v11 = vadd.f32 %v756_v9, %v300_v5  ;;  %v501_v12 = vadd.f32 %v768_v10, %v308_v6  ;;  %v421_v13 = vpop.f32.mrb[3].mxu0  ;;  %v461_v14 = vpop.f32.mrb[3].mxu1 }
 0x13b   : > { %v492_v15 = vadd.f32 %v421_v13, %v299_v7  ;;  %v500_v16 = vadd.f32 %v461_v14, %v307_v8 }
 0x13c   : > { %509 = vst [vmem:[#allocation2 + $0x18] sm:$0xff] %v493_v11  ;;  %517 = vst [vmem:[#allocation2 + $0x58] sm:$0xff] %v501_v12 }
 0x13d   : > { %508 = vst [vmem:[#allocation2 + $0x10] sm:$0xff] %v492_v15  ;;  %516 = vst [vmem:[#allocation2 + $0x50] sm:$0xff] %v500_v16  ;;  %v759_v21 = vpop.f32.mrb[4].mxu0  ;;  %v771_v22 = vpop.f32.mrb[4].mxu1 }
 0x13e   : > { %v495_v23 = vadd.f32 %v759_v21, %v302_v17  ;;  %v503_v24 = vadd.f32 %v771_v22, %v310_v18  ;;  %v431_v25 = vpop.f32.mrb[5].mxu0  ;;  %v471_v26 = vpop.f32.mrb[5].mxu1 }
 0x13f   : > { %v494_v27 = vadd.f32 %v431_v25, %v301_v19  ;;  %v502_v28 = vadd.f32 %v471_v26, %v309_v20  ;;  %525 = sbr.rel (%p679_p5) target bundleno = 335 (0x14f), region = 74  ;;  %v527_v42 = vld [vmem:[#allocation2 + $0x8] sm:$0xff] (!%p679_p5) }
 0x140   : > { %511 = vst [vmem:[#allocation2 + $0x28] sm:$0xff] %v495_v23  ;;  %519 = vst [vmem:[#allocation2 + $0x68] sm:$0xff] %v503_v24  ;;  %v526_v41 = vld [vmem:[#allocation2] sm:$0xff] (!%p679_p5)  ;;  %v535_v50 = vld [vmem:[#allocation2 + $0x48] sm:$0xff] (!%p679_p5) }
 0x141   : > { %510 = vst [vmem:[#allocation2 + $0x20] sm:$0xff] %v494_v27  ;;  %518 = vst [vmem:[#allocation2 + $0x60] sm:$0xff] %v502_v28  ;;  %v762_v33 = vpop.f32.mrb[6].mxu0  ;;  %v774_v34 = vpop.f32.mrb[6].mxu1  ;;  %v534_v49 = vld [vmem:[#allocation2 + $0x40] sm:$0xff] (!%p679_p5) }
 0x142   : > { %v497_v35 = vadd.f32 %v762_v33, %v304_v29  ;;  %v505_v36 = vadd.f32 %v774_v34, %v312_v30  ;;  %v441_v37 = vpop.f32.mrb[7].mxu0  ;;  %v481_v38 = vpop.f32.mrb[7].mxu1  ;;  %542 = vst [vmem:[%s1175_s26] sm:$0xff] (!%p679_p5), %v526_v41  ;;  %543 = vst [vmem:[%s1175_s26 + $0x8] sm:$0xff] (!%p679_p5), %v527_v42 }
 0x143   : > { %v496_v39 = vadd.f32 %v441_v37, %v303_v31  ;;  %v504_v40 = vadd.f32 %v481_v38, %v311_v32  ;;  %v529_v44 = vld [vmem:[#allocation2 + $0x18] sm:$0xff] (!%p679_p5)  ;;  %550 = vst [vmem:[%s1175_s26 + $0x40] sm:$0xff] (!%p679_p5), %v534_v49  ;;  %551 = vst [vmem:[%s1175_s26 + $0x48] sm:$0xff] (!%p679_p5), %v535_v50 }
 0x144   : > { %513 = vst [vmem:[#allocation2 + $0x38] sm:$0xff] %v497_v35  ;;  %521 = vst [vmem:[#allocation2 + $0x78] sm:$0xff] %v505_v36  ;;  %v528_v43 = vld [vmem:[#allocation2 + $0x10] sm:$0xff] (!%p679_p5)  ;;  %v537_v52 = vld [vmem:[#allocation2 + $0x58] sm:$0xff] (!%p679_p5) }
 0x145   : > { %512 = vst [vmem:[#allocation2 + $0x30] sm:$0xff] %v496_v39  ;;  %520 = vst [vmem:[#allocation2 + $0x70] sm:$0xff] %v504_v40  ;;  %v536_v51 = vld [vmem:[#allocation2 + $0x50] sm:$0xff] (!%p679_p5) }
 0x146   : > { %544 = vst [vmem:[%s1175_s26 + $0x10] sm:$0xff] %v528_v43  ;;  %545 = vst [vmem:[%s1175_s26 + $0x18] sm:$0xff] %v529_v44 }
 0x147   : > { %v531_v46 = vld [vmem:[#allocation2 + $0x28] sm:$0xff]  ;;  %552 = vst [vmem:[%s1175_s26 + $0x50] sm:$0xff] %v536_v51  ;;  %553 = vst [vmem:[%s1175_s26 + $0x58] sm:$0xff] %v537_v52 }
 0x148   : > { %v530_v45 = vld [vmem:[#allocation2 + $0x20] sm:$0xff]  ;;  %547 = vst [vmem:[%s1175_s26 + $0x28] sm:$0xff] %v531_v46  ;;  %v539_v54 = vld [vmem:[#allocation2 + $0x68] sm:$0xff] }
 0x149   : > { %546 = vst [vmem:[%s1175_s26 + $0x20] sm:$0xff] %v530_v45  ;;  %v538_v53 = vld [vmem:[#allocation2 + $0x60] sm:$0xff]  ;;  %555 = vst [vmem:[%s1175_s26 + $0x68] sm:$0xff] %v539_v54 }
 0x14a   : > { %554 = vst [vmem:[%s1175_s26 + $0x60] sm:$0xff] %v538_v53 }
 0x14b   : > { %v533_v48 = vld [vmem:[#allocation2 + $0x38] sm:$0xff] }
 0x14c   : > { %v532_v47 = vld [vmem:[#allocation2 + $0x30] sm:$0xff]  ;;  %549 = vst [vmem:[%s1175_s26 + $0x38] sm:$0xff] %v533_v48  ;;  %v541_v56 = vld [vmem:[#allocation2 + $0x78] sm:$0xff] }
 0x14d   : > { %548 = vst [vmem:[%s1175_s26 + $0x30] sm:$0xff] %v532_v47  ;;  %v540_v55 = vld [vmem:[#allocation2 + $0x70] sm:$0xff]  ;;  %557 = vst [vmem:[%s1175_s26 + $0x78] sm:$0xff] %v541_v56 }
 0x14e   : > { %556 = vst [vmem:[%s1175_s26 + $0x70] sm:$0xff] %v540_v55 }
 0x14f PF: > { %s686_s12 = sshll.u32 %s1011_s15, 11  ;;  %s572_s29 = sshll.u32 %s1175_s26, 4  ;;  %s1234_s29 = int_to_ptr.vmem [resolvable:$true] %s572_s29 }
 0x150   : > { %s1231_s25 = scalar_lea.hbm %s1298_s2, %s686_s12  ;;  %s1238_s5 = scalar_lea.sflag [#allocation5], %s266_s28 }
 0x151   : > { %s913_s6 = scalar_lea.vmem %s1234_s29, 2048  ;;  %s1026_s15 = smov [#allocation4]  }
 0x152   : > { %p914_p6 = scmp.ne.s32.totalorder %s1234_s29, %s913_s6  ;;  %s917_s7 = sshll.u32 %s1026_s15, 4  ;;  %s918_s7 = int_to_ptr.vmem [resolvable:$false] %s917_s7 }
 0x153   : > { %s919_s8 = scalar_lea.vmem %s918_s7, 4096  ;;  %p920_p10 = scmp.lt.s32.totalorder %s1234_s29, %s918_s7 }
 0x154   : > { %p915_p8 = pnand %p914_p6, %p1116_p7  ;;  %p921_p11 = scmp.lt.s32.totalorder %s919_s8, %s913_s6 }
 0x156   : > { %p916_p9 = pneg %p915_p8  ;;  %p922_p13 = por %p921_p11, %p920_p10 }
 0x158   : > { %p923_p0 = pnand %p922_p13, %p916_p9 }
 0x15a   : > { %926 = shalt.err (!%p923_p0)
}
 0x15b   : > { %s927_s28 = scalar_lea.hbm %s1231_s25, 2048  ;;  %s931_s24 = scalar_lea.hbm %s1298_s2, 4096 }
 0x15c   : > { %p928_p1 = scmp.ne.s32.totalorder %s1231_s25, %s927_s28  ;;  %p932_p4 = scmp.lt.u32.totalorder %s1231_s25, %s1298_s2 }
 0x15d   : > { %p933_p5 = scmp.lt.u32.totalorder %s931_s24, %s927_s28  ;;  %p935_p8 = scmp.lt.u32.totalorder %s927_s28, %s1231_s25 }
 0x15e   : > { %p929_p2 = pnand %p928_p1, %p1116_p7 }
 0x15f   : > { %p934_p6 = por %p933_p5, %p932_p4 }
 0x160   : > { %p930_p3 = pneg %p929_p2 }
 0x161   : > { %p936_p9 = por %p935_p8, %p934_p6 }
 0x163   : > { %p937_p10 = pnand %p936_p9, %p930_p3 }
 0x165   : > { %940 = shalt.err (!%p937_p10)
}
 0x166   : > { %s1027_s14 = smov 128   ;;  %s1028_s23 = smov 8  }
 0x167   : > { %823 = dma.vmem_to_hbm [thread:$0]  (%p1116_p7), %s1234_s29, 2048, %s1231_s25, %s1238_s5, %s1027_s14, %s1027_s14, %s1028_s23  }
 0x168 PF: > { %p829_p11 = scmp.ge.s32.totalorder %s1023_s18, 2  ;;  %s587_s6 = sand.u32 1, %s987_s9  }
 0x169   : > { %s588_s15 = scalar_lea.sflag [#allocation5], %s587_s6 }
 0x16a   : > { %p826_p13 = pnand %p829_p11, %p1124_p12 }
 0x16c   : > { %982 = dma.done.wait (!%p826_p13), %s588_s15, 2048  }
 0x16d   : > { %984 = vsyncadd (!%p826_p13), %s588_s15, 4294965248  ;;  %s15_s18 = sadd.s32 1, %s1023_s18   ;;  %s1302_s9 = smov %s991_s10 }
 0x16e   : > { %p12_p0 = scmp.ge.s32.totalorder %s15_s18, 6   ;;  %s1303_s10 = smov %s995_s11 }
 0x16f   : > { %s1304_s11 = smov %s1129_s3  ;;  %s1305_s12 = smov %s1003_s13 }
 0x170   : > { %s1306_s13 = smov %s1132_s4  ;;  %s1307_s14 = smov %s1015_s16 }
 0x171   : > { %s1308_s15 = smov %s1019_s17  ;;  %s1309_s16 = smov %s1312_s21 }
 0x172   : > { %s1310_s17 = smov %s1316_s22  ;;  %14 = sbr.rel (!%p12_p0) target bundleno = 6 (0x6), region = 117 }
 0x179   :  { %593 = vsyncpa [#allocation5], 1 }
 0x17a   :  { %595 = vsyncpa [#allocation5 + $0x1], 1 }

</bundles_post_ra>
